<compile_context>
chip_gen: v7x
topology: tpu7x:2x2x1
jax: 0.10.0
libtpu: 0.0.40
codegen_flags: <defaults>
</compile_context>

<pallas_src>
import numpy as np
import jax
import jax.numpy as jnp
from jax.experimental import pallas as pl
from jax.experimental.pallas import tpu as pltpu


def _counts_kernel(den_ref, pp_ref, wx_ref, wy_ref, out_ref):
    """Per-(image, box-tile) exact PrRoIPool(1x1)*area integrals."""
    den = den_ref[...].astype(jnp.float32)          # (H, W)
    wx = wx_ref[...]                                 # (TM, W)  f32
    wy = wy_ref[...]                                 # (TM, H)  f32
    # Fused multiply-multiply-reduce: cast the (possibly bf16) tile to f32
    # per-vreg, reduce the lane (W) axis against the x hat-integrals, then
    # the sublane (H) axis against the y hat-integrals.
    row = jnp.sum(pp_ref[...].astype(jnp.float32) * den[None, :, :]
                  * wx[:, None, :], axis=-1)          # (TM, H)
    out_ref[...] = jnp.sum(row * wy, axis=-1)[None, :, None]   # (1, TM, 1)


def _choose_tm(M, H, W, pp_itemsize, budget_bytes=32 * 1024 * 1024):
    """Largest 8-aligned box-tile whose pipelined working set fits the budget.

    Working set ~= 2 x (TM*H*W*itemsize)  (double-buffered pp tile)
                 + 2 x (TM*H*W*4)         (f32 elementwise/reduce intermediates)
    """
    per_row = H * W * (2 * pp_itemsize + 2 * 4)
    tm = max(1, budget_bytes // per_row)
    tm = int(min(tm, M))
    if tm < M:
        # wx/wy blocks have TM on the second-minor axis: keep it 8-aligned.
        tm = max(8, (tm // 8) * 8)
    return tm


def _prroi_counts(den4, post_prob, wx, wy, *, tm=None,
                  vmem_limit_bytes=48 * 1024 * 1024):
    """counts[b, m] = integral of den[b]*post_prob[b, m] over box (b, m)."""
    B, _, H, W = den4.shape
    M = post_prob.shape[1]
    pp_itemsize = jnp.dtype(post_prob.dtype).itemsize

    if tm is None:
        tm = _choose_tm(M, H, W, pp_itemsize)
    tm = int(min(tm, M))
    if tm < M:
        tm = max(8, (tm // 8) * 8)
    n_mt = pl.cdiv(M, tm)
    m_pad = n_mt * tm

    # Advisory cost hint: the kernel is HBM-bandwidth bound on post_prob.
    flops = 3 * B * M * H * W + 2 * B * M * H
    bytes_accessed = (B * M * H * W * pp_itemsize
                      + B * H * W * jnp.dtype(den4.dtype).itemsize
                      + B * M * (H + W) * 4
                      + B * m_pad * 4)

    out = pl.pallas_call(
        _counts_kernel,
        out_shape=jax.ShapeDtypeStruct((B, m_pad, 1), jnp.float32),
        grid_spec=pltpu.PrefetchScalarGridSpec(
            num_scalar_prefetch=0,
            grid=(B, n_mt),
            in_specs=[
                # den (B,1,H,W): leading dims squeezed; block index constant
                # across the inner m axis -> DMA'd once per image.
                pl.BlockSpec((None, None, H, W), lambda b, m: (b, 0, 0, 0)),
                # post_prob (B,M,H,W): box-tiled, native dtype.
                pl.BlockSpec((None, tm, H, W), lambda b, m: (b, m, 0, 0)),
                pl.BlockSpec((None, tm, W), lambda b, m: (b, m, 0)),
                pl.BlockSpec((None, tm, H), lambda b, m: (b, m, 0)),
            ],
            out_specs=pl.BlockSpec((1, tm, 1), lambda b, m: (b, m, 0)),
        ),
        compiler_params=pltpu.CompilerParams(
            dimension_semantics=("parallel", "parallel"),
            vmem_limit_bytes=vmem_limit_bytes,
        ),
        cost_estimate=pl.CostEstimate(flops=flops, transcendentals=0,
                                      bytes_accessed=bytes_accessed),
    )(den4, post_prob, wx, wy)
    return out[:, :M, 0]                 # (B, M); padded rows sliced off


def _hat_cumint(t):
    """Cumulative integral of the unit hat basis tri(s) = max(0, 1 - |s|)."""
    tc = jnp.clip(t, -1.0, 1.0)
    return jnp.where(tc <= 0.0, 0.5 * (tc + 1.0) ** 2, 0.5 + tc * (1.0 - 0.5 * tc))


def _interval_hat_weights(lo, hi, n):
    """Integral of tri(t - k), k = 0..n-1, over [lo, hi].  lo/hi: (..., 1)."""
    k = jnp.arange(n, dtype=jnp.float32)
    return _hat_cumint(hi - k) - _hat_cumint(lo - k)


class DncLoss:
    """Forward-equivalent of the PyTorch dnc_loss module.

    Head boxes are fixed-size padded with label == -1 in hboxes[..., 4];
    valid boxes have label > 0 and post_probs channel j corresponds to head
    box row j (valid boxes packed first), matching the original layout.
    """

    def __init__(self, size, down, ratio=0.41, tm=None):
        self.size = size
        self.down = float(down)
        self.ratio = ratio
        self.tm = tm                     # optional box-tile override

    def __call__(self, cls_preds, reg_preds, off_preds, den_preds, fboxes,
                 hboxes, ctr_masks, post_probs, factor=1.0):
        # cls/reg/off/ctr_masks/fboxes never contribute to the returned value
        # in the reference forward (fboxes are filtered but unused).
        del cls_preds, reg_preds, off_preds, fboxes, ctr_masks
        _, _, H, W = den_preds.shape

        # TODO(synk): dynamic boolean filtering (boxes[label != -1]) has no TPU
        # equivalent; fixed-size padded boxes + a validity mask are used instead.
        labels = hboxes[..., 4]
        valid = labels > 0.0                                   # (B, M)
        boxes = hboxes[..., :4].astype(jnp.float32) / self.down
        x1, y1 = boxes[..., 0:1], boxes[..., 1:2]
        x2, y2 = boxes[..., 2:3], boxes[..., 3:4]
        # Clipped-hat weights == zero-padded bilinear PrRoIPool, including
        # boxes that extend slightly past the feature-map border.
        wx = _interval_hat_weights(x1, x2, W)                  # (B, M, W) f32
        wy = _interval_hat_weights(y1, y2, H)                  # (B, M, H) f32

        # den_preds / post_probs go to the kernel in their native dtype.
        counts = _prroi_counts(den_preds, post_probs, wx, wy, tm=self.tm)

        num_valid = jnp.sum(valid.astype(jnp.float32), axis=1)            # (B,)
        per_img = jnp.sum(jnp.where(valid, jnp.abs(counts - 1.0), 0.0), axis=1)
        per_img = per_img / jnp.maximum(num_valid, 1.0)        # 0 when no valid boxes
        return jnp.sum(per_img) * factor


# ----------------------------- reference check -----------------------------
def _prroi_1x1_ref(feat, box):
    """PrRoIPool(out_size=1, spatial_scale=1): exact zero-padded integration."""
    x1, y1, x2, y2 = [float(v) for v in box]
    H, W = feat.shape

    def val(h, w):
        return float(feat[h, w]) if (0 <= h < H and 0 <= w < W) else 0.0

    integral = 0.0
    for h0 in range(-1, H):
        c, d = max(y1, float(h0)), min(y2, float(h0 + 1))
        if d <= c:
            continue
        va, vb = c - h0, d - h0
        iv1 = 0.5 * (vb * vb - va * va)
        iv0 = (vb - va) - iv1
        for w0 in range(-1, W):
            a, b = max(x1, float(w0)), min(x2, float(w0 + 1))
            if b <= a:
                continue
            ua, ub = a - w0, b - w0
            iu1 = 0.5 * (ub * ub - ua * ua)
            iu0 = (ub - ua) - iu1
            integral += (val(h0, w0) * iu0 * iv0 + val(h0, w0 + 1) * iu1 * iv0
                         + val(h0 + 1, w0) * iu0 * iv1 + val(h0 + 1, w0 + 1) * iu1 * iv1)
    area = (x2 - x1) * (y2 - y1)
    return integral / area if area > 0.0 else 0.0


def _reference_dnc_loss(den_preds, hboxes, post_probs, down, factor):
    den = np.asarray(jax.device_get(den_preds), dtype=np.float64)
    hb = np.asarray(jax.device_get(hboxes), dtype=np.float64)
    pp = np.asarray(jax.device_get(post_probs), dtype=np.float64)
    loss = 0.0
    for i in range(den.shape[0]):
        hbi = hb[i][hb[i][:, -1] != -1]
        mask = hbi[:, -1] > 0
        nv = int(mask.sum())
        if nv == 0:
            continue
        bboxes = hbi[mask, :-1] / down
        for j in range(nv):
            x1, y1, x2, y2 = bboxes[j]
            area = (x2 - x1) * (y2 - y1)
            feat = den[i, 0] * pp[i, j]
            count = area * _prroi_1x1_ref(feat, (x1, y1, x2, y2))
            loss += abs(count - 1.0) / nv
    return loss * factor


if __name__ == "__main__":
    key = jax.random.PRNGKey(0)
    B, M, H, W = 2, 16, 16, 16
    down = 4.0
    factor = 1.5
    ks = jax.random.split(key, 8)

    # Dominant tensors in bf16: the kernel reads them natively and casts
    # per-tile to f32 (half the HBM traffic of a wrapper f32 upcast).
    den_preds = jax.random.uniform(
        ks[0], (B, 1, H, W), minval=0.01, maxval=0.2).astype(jnp.bfloat16)
    post_probs = jax.random.uniform(
        ks[1], (B, M, H, W), minval=0.0, maxval=1.0).astype(jnp.bfloat16)

    # head boxes in the original image scale (down * feature size); valid first.
    n_valid = jnp.asarray([5, 9])
    cx = jax.random.uniform(ks[2], (B, M), minval=10.0, maxval=50.0)
    cy = jax.random.uniform(ks[3], (B, M), minval=10.0, maxval=50.0)
    hw = jax.random.uniform(ks[4], (B, M), minval=2.0, maxval=8.0)
    hh = jax.random.uniform(ks[5], (B, M), minval=2.0, maxval=8.0)
    x1 = jnp.clip(cx - hw, 0.0, (W - 1) * down)
    x2 = jnp.clip(cx + hw, 0.0, (W - 1) * down)
    y1 = jnp.clip(cy - hh, 0.0, (H - 1) * down)
    y2 = jnp.clip(cy + hh, 0.0, (H - 1) * down)
    # A couple of boxes straddle the image border to exercise the zero-padded
    # PrRoIPool behaviour outside the feature-map grid.
    x1 = x1.at[0, 0].set(-3.0)
    y1 = y1.at[1, 1].set(-2.5)
    valid_mask = jnp.arange(M)[None, :] < n_valid[:, None]
    coords = jnp.where(valid_mask[..., None], jnp.stack([x1, y1, x2, y2], -1), 0.0)
    labels = jnp.where(valid_mask, 1.0, -1.0)
    hboxes = jnp.concatenate([coords, labels[..., None]], axis=-1)        # (B, M, 5)

    cls_preds = jax.random.normal(ks[6], (B, 1, H, W))
    reg_preds = jax.random.normal(ks[7], (B, 4, H, W))
    off_preds = jnp.zeros((B, 2, H, W))
    ctr_masks = jnp.zeros((B, H, W))
    fboxes = hboxes                     # unused by the forward value

    # tm=8 exercises the (B, M//tm) box-tiled grid (grid = (2, 2)).
    loss_fn = DncLoss(size=(H * down, W * down), down=down, tm=8)
    out = loss_fn(cls_preds, reg_preds, off_preds, den_preds, fboxes, hboxes,
                  ctr_masks, post_probs, factor=factor)
    out = jax.block_until_ready(out)

    ref = _reference_dnc_loss(den_preds, hboxes, post_probs, down, factor)
    out_f, ref_f = float(out), float(ref)
    assert abs(out_f - ref_f) <= 1e-4 + 1e-4 * abs(ref_f), (out_f, ref_f)
    print("KERNEL_OK")
</pallas_src>

<mosaic_0001>
module attributes {stable_mosaic.version = 11 : i64} {
  func.func @_counts_kernel(%arg0: i32, %arg1: i32, %arg2: memref<1x1x16x16xbf16, #tpu.memory_space<vmem>>, %arg3: memref<1x8x16x16xbf16, #tpu.memory_space<vmem>>, %arg4: memref<1x8x16xf32, #tpu.memory_space<vmem>>, %arg5: memref<1x8x16xf32, #tpu.memory_space<vmem>>, %arg6: memref<1x8x1xf32, #tpu.memory_space<vmem>>) attributes {dimension_semantics = [#tpu.dimension_semantics<parallel>, #tpu.dimension_semantics<parallel>], iteration_bounds = array<i64: 2, 2>, scalar_prefetch = 0 : i64, scratch_operands = 0 : i64, tpu.core_type = #tpu.core_type<tc>, window_params = [{transform_indices = @transform_0, window_bounds = array<i64: 1, 1, 16, 16>}, {transform_indices = @transform_1, window_bounds = array<i64: 1, 8, 16, 16>}, {transform_indices = @transform_2, window_bounds = array<i64: 1, 8, 16>}, {transform_indices = @transform_3, window_bounds = array<i64: 1, 8, 16>}, {transform_indices = @transform_4, window_bounds = array<i64: 1, 8, 1>}]} {
    %c0 = arith.constant 0 : index
    %c0_0 = arith.constant 0 : index
    %c0_1 = arith.constant 0 : index
    %c0_2 = arith.constant 0 : index
    %0 = vector.load %arg2[%c0, %c0_0, %c0_1, %c0_2] : memref<1x1x16x16xbf16, #tpu.memory_space<vmem>>, vector<1x1x16x16xbf16>
    %1 = vector.shape_cast %0 : vector<1x1x16x16xbf16> to vector<16x16xbf16>
    %2 = arith.extf %1 : vector<16x16xbf16> to vector<16x16xf32>
    %c0_3 = arith.constant 0 : index
    %c0_4 = arith.constant 0 : index
    %c0_5 = arith.constant 0 : index
    %3 = vector.load %arg4[%c0_3, %c0_4, %c0_5] : memref<1x8x16xf32, #tpu.memory_space<vmem>>, vector<1x8x16xf32>
    %4 = vector.shape_cast %3 : vector<1x8x16xf32> to vector<8x16xf32>
    %c0_6 = arith.constant 0 : index
    %c0_7 = arith.constant 0 : index
    %c0_8 = arith.constant 0 : index
    %5 = vector.load %arg5[%c0_6, %c0_7, %c0_8] : memref<1x8x16xf32, #tpu.memory_space<vmem>>, vector<1x8x16xf32>
    %6 = vector.shape_cast %5 : vector<1x8x16xf32> to vector<8x16xf32>
    %c0_9 = arith.constant 0 : index
    %c0_10 = arith.constant 0 : index
    %c0_11 = arith.constant 0 : index
    %c0_12 = arith.constant 0 : index
    %7 = vector.load %arg3[%c0_9, %c0_10, %c0_11, %c0_12] : memref<1x8x16x16xbf16, #tpu.memory_space<vmem>>, vector<1x8x16x16xbf16>
    %8 = vector.shape_cast %7 : vector<1x8x16x16xbf16> to vector<8x16x16xbf16>
    %9 = arith.extf %8 : vector<8x16x16xbf16> to vector<8x16x16xf32>
    %10 = vector.shape_cast %2 : vector<16x16xf32> to vector<1x16x16xf32>
    %11 = vector.broadcast %10 : vector<1x16x16xf32> to vector<8x16x16xf32>
    %12 = arith.mulf %9, %11 : vector<8x16x16xf32>
    %13 = vector.shape_cast %4 : vector<8x16xf32> to vector<8x1x16xf32>
    %14 = vector.broadcast %13 : vector<8x1x16xf32> to vector<8x16x16xf32>
    %15 = arith.mulf %12, %14 : vector<8x16x16xf32>
    %cst = arith.constant dense<0.000000e+00> : vector<8x16xf32>
    %16 = vector.multi_reduction <add>, %15, %cst [2] : vector<8x16x16xf32> to vector<8x16xf32>
    %17 = arith.mulf %16, %6 : vector<8x16xf32>
    %cst_13 = arith.constant dense<0.000000e+00> : vector<8xf32>
    %18 = vector.multi_reduction <add>, %17, %cst_13 [1] : vector<8x16xf32> to vector<8xf32>
    %19 = vector.shape_cast %18 : vector<8xf32> to vector<1x8x1xf32>
    %c0_14 = arith.constant 0 : index
    %c0_15 = arith.constant 0 : index
    %c0_16 = arith.constant 0 : index
    %20 = vector.load %arg6[%c0_14, %c0_15, %c0_16] : memref<1x8x1xf32, #tpu.memory_space<vmem>>, vector<1x8x1xf32>
    tpu.vector_store %arg6[%c0_14, %c0_15, %c0_16], %19 {strides = array<i32>} : memref<1x8x1xf32, #tpu.memory_space<vmem>>, vector<1x8x1xf32>,
    return
  }
  func.func @transform_0(%arg0: i32, %arg1: i32) -> (i32, i32, i32, i32) {
    %c0_i32 = arith.constant 0 : i32
    %c0_i32_0 = arith.constant 0 : i32
    %c0_i32_1 = arith.constant 0 : i32
    %c0_i32_2 = arith.constant 0 : i32
    return %arg0, %c0_i32, %c0_i32_0, %c0_i32_1 : i32, i32, i32, i32
  }
  func.func @transform_1(%arg0: i32, %arg1: i32) -> (i32, i32, i32, i32) {
    %c0_i32 = arith.constant 0 : i32
    %c0_i32_0 = arith.constant 0 : i32
    %c0_i32_1 = arith.constant 0 : i32
    return %arg0, %arg1, %c0_i32, %c0_i32_0 : i32, i32, i32, i32
  }
  func.func @transform_2(%arg0: i32, %arg1: i32) -> (i32, i32, i32) {
    %c0_i32 = arith.constant 0 : i32
    %c0_i32_0 = arith.constant 0 : i32
    return %arg0, %arg1, %c0_i32 : i32, i32, i32
  }
  func.func @transform_3(%arg0: i32, %arg1: i32) -> (i32, i32, i32) {
    %c0_i32 = arith.constant 0 : i32
    %c0_i32_0 = arith.constant 0 : i32
    return %arg0, %arg1, %c0_i32 : i32, i32, i32
  }
  func.func @transform_4(%arg0: i32, %arg1: i32) -> (i32, i32, i32) {
    %c0_i32 = arith.constant 0 : i32
    %c0_i32_0 = arith.constant 0 : i32
    return %arg0, %arg1, %c0_i32 : i32, i32, i32
  }
}

</mosaic_0001>

<bundles_post_ra>
// kernel: tpu_custom_call.1
= control target key start
LH: loop header
LB: loop body
LE: loop exit
PB: predicated region body
PF: predicated region fallthrough
CT: control target
= control target key end

     0   :  { %s1888_s0 = inlined_call_operand.hbm [shape: bf16[2,1,16,16], index: 0, kind: input, shape index: {}]   ;;  %s1889_s1 = inlined_call_operand.hbm [shape: bf16[2,16,16,16], index: 1, kind: input, shape index: {}]   ;;  %s1890_s2 = inlined_call_operand.hbm [shape: f32[2,16,16], index: 2, kind: input, shape index: {}]   ;;  %s1891_s3 = inlined_call_operand.hbm [shape: f32[2,16,16], index: 3, kind: input, shape index: {}]   ;;  %s1892_s4 = inlined_call_operand.vmem [shape: f32[2,16,1], index: 4, kind: output, shape index: {}]  }
   0x1   :  { %1908 = sst [smem:[#allocation18_spill]] %s1888_s0 }
   0x2   :  { %1909 = sst [smem:[#allocation19_spill]] %s1889_s1 }
   0x3   :  { %1910 = sst [smem:[#allocation20_spill]] %s1892_s4 }
   0x4   :  { %9 = vsyncpa [#allocation3], 0 }
   0x5   :  { %11 = vsyncpa [#allocation3 + $0x1], 0 }
   0x6   :  { %12 = vsyncpa [#allocation5], 0 }
   0x7   :  { %14 = vsyncpa [#allocation5 + $0x1], 0 }
   0x8   :  { %15 = vsyncpa [#allocation8], 0 }
   0x9   :  { %17 = vsyncpa [#allocation8 + $0x1], 0  ;;  %s1460_s15 = smov 0   ;;  %s1462_s16 = smov 0  }
   0xa   :  { %s1464_s17 = smov 0   ;;  %s1466_s18 = smov 0  }
   0xb   :  { %s1468_s19 = smov 0   ;;  %s1470_s20 = smov 0  }
   0xc   :  { %s1472_s21 = smov 0   ;;  %s1474_s22 = smov 0  }
   0xd   :  { %s1476_s23 = smov 0   ;;  %s1478_s24 = smov 0  }
   0xe   :  { %s1480_s25 = smov 0  }
   0xf LB: > { %1911 = sst [smem:[#allocation12_spill]] %s1405_s20  ;;  %s1893_s26 = sadd.s32 4294967295, %s1425_s25   ;;  %s1425_s25 = sphi %s1480_s25, %s23_s25   ;;  %s1421_s24 = sphi %s1478_s24, %s1956_s24   ;;  %s1417_s23 = sphi %s1476_s23, %s1955_s23   ;;  %s1413_s22 = sphi %s1474_s22, %s1954_s22   ;;  %s1409_s21 = sphi %s1472_s21, %s1953_s21   ;;  %s1405_s20 = sphi %s1470_s20, %s1945_s20   ;;  %s1401_s19 = sphi %s1468_s19, %s1952_s19   ;;  %s1397_s18 = sphi %s1466_s18, %s1951_s18   ;;  %s1393_s17 = sphi %s1464_s17, %s1950_s17   ;;  %s1389_s16 = sphi %s1462_s16, %s1949_s16   ;;  %s1385_s15 = sphi %s1460_s15, %s1948_s15  }
  0x10   : > { %1912 = sst [smem:[#allocation13_spill]] %s1409_s21  ;;  %s32_s27 = sadd.s32 1, %s1417_s23 }
  0x11   : > { %1913 = sst [smem:[#allocation14_spill]] %s1413_s22  ;;  %p33_p0 = scmp.ge.s32.totalorder %s32_s27, 2 }
  0x12   : > { %s35_s28 = sadd.s32 1, %s1421_s24  ;;  %p1899_p1 = scmp.eq.s32.totalorder %s1425_s25, 0 }
  0x13   : > { %p1519_p2 = scmp.eq.s32.totalorder %s1893_s26, 0  ;;  %s1958_s27 = smov (%p33_p0, %s32_s27), 0 }
  0x14   : > { %1915 = sst [smem:[#allocation15_spill]] %s1958_s27  ;;  %s1960_s28 = smov (!%p33_p0, %s35_s28), %s1421_s24 }
  0x15   : > { %s1914_s29 = scalar_select %p1519_p2, 1, 0 }
  0x16   : > { %s66_s30 = ssub.s32 %s1417_s23, %s1958_s27  ;;  %s70_s5 = sadd.s32 1, %s1393_s17 }
  0x17   : > { %p37_p3 = scmp.ge.s32.totalorder %s1960_s28, 2  ;;  %p77_p4 = scmp.ne.s32.totalorder %s1393_s17, %s1389_s16 }
  0x18   : > { %p83_p5 = scmp.ne.s32.totalorder %s1389_s16, %s1385_s15  ;;  %p1898_p8 = scmp.lt.s32.totalorder %s1425_s25, 4 }
  0x19   : > { %s1962_s28 = smov (%p37_p3, %s1960_s28), 0  ;;  %p1536_p6 = por %p77_p4, %p1899_p1 }
  0x1a   : > { %1916 = sst [smem:[#allocation16_spill]] %s1962_s28  ;;  %p1542_p7 = por %p83_p5, %p1519_p2 }
  0x1b   : > { %s1548_s8 = ssub.s32 %s1421_s24, %s1962_s28  ;;  %s212_s10 = sand.u32 1, %s1425_s25  }
  0x1c   : > { %s1918_s7 = scalar_select %p1542_p7, 1, 0 }
  0x1d   : > { %s67_s9 = sor.u32 %s66_s30, %s1548_s8  ;;  %s1558_s12 = sand.u32 1, %s1393_s17  }
  0x1e   : > { %p68_p10 = scmp.eq.s32.totalorder %s67_s9, 0  ;;  %s1025_s13 = sshll.u32 %s1558_s12, 6 }
  0x1f   : > { %s1046_s14 = sshll.u32 %s1417_s23, 4  ;;  %s1028_s15 = sshll.u32 %s1421_s24, 5 }
  0x20   : > { %s1555_s11 = scalar_select %p68_p10, %s1393_s17, %s70_s5  }
  0x21   : > { %s223_s26 = sadd.s32 %s1046_s14, %s1028_s15  ;;  %s216_s28 = scalar_lea.vmem [#allocation4], %s1025_s13 }
  0x22   : > { %s226_s27 = sshll.u32 %s216_s28, 4  ;;  %s1029_s4 = sshll.u32 %s223_s26, 6  ;;  %s1563_s27 = int_to_ptr.vmem [resolvable:$true] %s226_s27 }
  0x23   : > { %s1919_s1 = sld [smem:[#allocation19_spill]]  ;;  %p1574_p11 = pnand %p1898_p8, %p1536_p6 }
  0x24   : > { %s1580_s26 = scalar_lea.sflag [#allocation5], %s212_s10 }
  0x25   : > { %s1920_s5 = scalar_select %p1574_p11, 1, 0 }
  0x26   : > { %p1586_p3 = pneg %p1574_p11 }
  0x29   : > { %s1568_s30 = scalar_lea.hbm %s1919_s1, %s1029_s4  ;;  %s1212_s6 = scalar_lea.hbm %s1919_s1, 4096 }
  0x2a   : > { %s1207_s28 = scalar_lea.hbm %s1568_s30, 1024  ;;  %p1213_p6 = scmp.lt.u32.totalorder %s1568_s30, %s1919_s1 }
  0x2b   : > { %p1208_p0 = scmp.ne.s32.totalorder %s1568_s30, %s1207_s28  ;;  %p1214_p10 = scmp.lt.u32.totalorder %s1212_s6, %s1207_s28 }
  0x2c   : > { %p1216_p1 = scmp.lt.u32.totalorder %s1207_s28, %s1568_s30 }
  0x2d   : > { %p1210_p4 = pnand %p1586_p3, %p1208_p0  ;;  %p1215_p8 = por %p1214_p10, %p1213_p6 }
  0x2f   : > { %p1211_p5 = pneg %p1210_p4  ;;  %p1217_p9 = por %p1216_p1, %p1215_p8 }
  0x31   : > { %p1218_p12 = pnand %p1217_p9, %p1211_p5 }
  0x33   : > { %1221 = shalt.err (!%p1218_p12)
}
  0x34   : > { %s1222_s10 = scalar_lea.vmem %s1563_s27, 1024  ;;  %s1427_s14 = smov [#allocation4]  }
  0x35   : > { %p1223_p0 = scmp.ne.s32.totalorder %s1563_s27, %s1222_s10  ;;  %s1227_s15 = sshll.u32 %s1427_s14, 4  ;;  %s1228_s15 = int_to_ptr.vmem [resolvable:$false] %s1227_s15 }
  0x36   : > { %s1229_s21 = scalar_lea.vmem %s1228_s15, 2048  ;;  %p1230_p7 = scmp.lt.s32.totalorder %s1563_s27, %s1228_s15 }
  0x37   : > { %p1225_p4 = pnand %p1223_p0, %p1586_p3  ;;  %p1231_p2 = scmp.lt.s32.totalorder %s1229_s21, %s1222_s10 }
  0x39   : > { %p1226_p13 = pneg %p1225_p4  ;;  %p1232_p6 = por %p1231_p2, %p1230_p7 }
  0x3b   : > { %p1233_p10 = pnand %p1232_p6, %p1226_p13 }
  0x3d   : > { %1236 = shalt.err (!%p1233_p10)
}
  0x3e   : > { %s1902_s28 = smov 64   ;;  %s1903_s22 = smov 4  }
  0x3f   : > { %1104 = dma.hbm_to_vmem [thread:$0]  (!%p1574_p11), %s1568_s30, 1024, %s1563_s27, %s1580_s26, %s1902_s28, %s1902_s28, %s1903_s22  }
  0x40   : > { %p1922_p1 = scmp.lt.s32.totalorder %s1425_s25, 5  ;;  %p1923_p2 = scmp.ge.s32.totalorder %s1425_s25, 1 }
  0x41   : > { %s42_s9 = sadd.s32 1, %s1405_s20  ;;  %p49_p8 = scmp.ne.s32.totalorder %s1405_s20, %s1401_s19 }
  0x42   : > { %p1617_p7 = pnand %p1923_p2, %p1922_p1  ;;  %p1925_p9 = scmp.eq.s32.totalorder %s1548_s8, 0 }
  0x43   : > { %p1927_p12 = scmp.eq.s32.totalorder %s1425_s25, 0  ;;  %p55_p5 = scmp.ne.s32.totalorder %s1401_s19, %s1397_s18 }
  0x44   : > { %s1924_s6 = scalar_select %p1617_p7, 1, 0 }
  0x45   : > { %s1627_s13 = scalar_select %p1925_p9, %s1405_s20, %s42_s9  }
  0x46   : > { %p51_p13 = por %p1927_p12, %p49_p8  ;;  %s191_s10 = sand.u32 1, %s1405_s20  }
  0x47   : > { %1926 = sst [smem:[#allocation17_spill]] %s1627_s13  ;;  %s1045_s14 = sshll.u32 %s1421_s24, 7 }
  0x48   : > { %p1928_p0 = scmp.ne.s32.totalorder %s1914_s29, 0  ;;  %s1022_s27 = sshll.u32 %s191_s10, 3 }
  0x49   : > { %s1930_s0 = sld [smem:[#allocation18_spill]]  ;;  %p1931_p6 = scmp.lt.s32.totalorder %s1425_s25, 4 }
  0x4a   : > { %p1637_p4 = por %p1928_p0, %p55_p5  ;;  %s195_s29 = scalar_lea.vmem [#allocation2], %s1022_s27 }
  0x4b   : > { %p1648_p10 = pnand %p1931_p6, %p51_p13  ;;  %s202_s8 = sshll.u32 %s195_s29, 4  ;;  %s1653_s8 = int_to_ptr.vmem [resolvable:$true] %s202_s8 }
  0x4c   : > { %s1929_s15 = scalar_select %p1637_p4, 1, 0 }
  0x4d   : > { %s1030_s9 = sshll.u32 %s1558_s12, 3  ;;  %s1655_s22 = scalar_lea.sflag [#allocation3], %s191_s10 }
  0x4e   : > { %p1239_p2 = pneg %p1648_p10 }
  0x4f   : > { %s1644_s28 = scalar_lea.hbm %s1930_s0, %s1045_s14  ;;  %s1242_s1 = scalar_lea.hbm %s1930_s0, 256 }
  0x50   : > { %s1237_s14 = scalar_lea.hbm %s1644_s28, 128  ;;  %p1243_p12 = scmp.lt.u32.totalorder %s1644_s28, %s1930_s0 }
  0x51   : > { %p1238_p1 = scmp.ne.s32.totalorder %s1644_s28, %s1237_s14  ;;  %p1244_p13 = scmp.lt.u32.totalorder %s1242_s1, %s1237_s14 }
  0x52   : > { %p1246_p0 = scmp.lt.u32.totalorder %s1237_s14, %s1644_s28 }
  0x53   : > { %p1240_p8 = pnand %p1239_p2, %p1238_p1  ;;  %p1245_p5 = por %p1244_p13, %p1243_p12 }
  0x55   : > { %p1241_p9 = pneg %p1240_p8  ;;  %p1247_p6 = por %p1246_p0, %p1245_p5 }
  0x57   : > { %p1248_p4 = pnand %p1247_p6, %p1241_p9 }
  0x59   : > { %1251 = shalt.err (!%p1248_p4)
}
  0x5a   : > { %s1252_s10 = scalar_lea.vmem %s1653_s8, 128  ;;  %s1430_s29 = smov [#allocation2]  }
  0x5b   : > { %p1253_p1 = scmp.ne.s32.totalorder %s1653_s8, %s1252_s10  ;;  %s1257_s30 = sshll.u32 %s1430_s29, 4  ;;  %s1258_s30 = int_to_ptr.vmem [resolvable:$false] %s1257_s30 }
  0x5c   : > { %s1259_s13 = scalar_lea.vmem %s1258_s30, 256  ;;  %p1260_p11 = scmp.lt.s32.totalorder %s1653_s8, %s1258_s30 }
  0x5d   : > { %p1255_p8 = pnand %p1253_p1, %p1239_p2  ;;  %p1261_p12 = scmp.lt.s32.totalorder %s1259_s13, %s1252_s10 }
  0x5f   : > { %p1256_p7 = pneg %p1255_p8  ;;  %p1262_p13 = por %p1261_p12, %p1260_p11 }
  0x61   : > { %p1263_p5 = pnand %p1262_p13, %p1256_p7 }
  0x63   : > { %1266 = shalt.err (!%p1263_p5)
}
  0x64   : > { %s1933_s1 = smov 4   ;;  %s1934_s14 = smov 64  }
  0x65   : > { %1101 = dma.hbm_to_vmem [thread:$0]  (!%p1648_p10), %s1644_s28, 128, %s1653_s8, %s1655_s22, %s1934_s14, %s1934_s14, %s1933_s1  }
  0x66   : > { %s1031_s21 = sshll.u32 %s1421_s24, 1  ;;  %s240_s10 = scalar_lea.vmem [#allocation6], %s1030_s9 }
  0x67   : > { %s1688_s27 = sadd.s32 %s1417_s23, %s1031_s21  ;;  %s249_s29 = sshll.u32 %s240_s10, 4  ;;  %s250_s29 = int_to_ptr.vmem [resolvable:$true] %s249_s29 }
  0x68   : > { %s1032_s18 = sshll.u32 %s1688_s27, 7  ;;  %s1272_s8 = scalar_lea.hbm %s1890_s2, 512 }
  0x69   : > { %s247_s0 = scalar_lea.hbm %s1890_s2, %s1032_s18 }
  0x6a   : > { %s1267_s20 = scalar_lea.hbm %s247_s0, 128  ;;  %p1273_p10 = scmp.lt.u32.totalorder %s247_s0, %s1890_s2 }
  0x6b   : > { %p1268_p11 = scmp.ne.s32.totalorder %s247_s0, %s1267_s20  ;;  %p1274_p2 = scmp.lt.u32.totalorder %s1272_s8, %s1267_s20 }
  0x6c   : > { %p1276_p0 = scmp.lt.u32.totalorder %s1267_s20, %s247_s0 }
  0x6d   : > { %p1270_p7 = pnand %p1268_p11, %p1586_p3  ;;  %p1275_p9 = por %p1274_p2, %p1273_p10 }
  0x6f   : > { %p1271_p4 = pneg %p1270_p7  ;;  %p1277_p6 = por %p1276_p0, %p1275_p9 }
  0x71   : > { %p1278_p1 = pnand %p1277_p6, %p1271_p4 }
  0x73   : > { %1281 = shalt.err (!%p1278_p1)
}
  0x74   : > { %s1282_s21 = scalar_lea.vmem %s250_s29, 128  ;;  %s1431_s10 = smov [#allocation6]  }
  0x75   : > { %p1283_p8 = scmp.ne.s32.totalorder %s250_s29, %s1282_s21  ;;  %s1287_s30 = sshll.u32 %s1431_s10, 4  ;;  %s1288_s30 = int_to_ptr.vmem [resolvable:$false] %s1287_s30 }
  0x76   : > { %s1289_s13 = scalar_lea.vmem %s1288_s30, 256  ;;  %p1290_p5 = scmp.lt.s32.totalorder %s250_s29, %s1288_s30 }
  0x77   : > { %p1285_p12 = pnand %p1283_p8, %p1586_p3  ;;  %p1291_p11 = scmp.lt.s32.totalorder %s1289_s13, %s1282_s21 }
  0x79   : > { %p1286_p13 = pneg %p1285_p12  ;;  %p1292_p7 = por %p1291_p11, %p1290_p5 }
  0x7b   : > { %p1293_p2 = pnand %p1292_p7, %p1286_p13 }
  0x7d   : > { %1296 = shalt.err (!%p1293_p2)
}
  0x7e   : > { %p1935_p10 = scmp.ne.s32.totalorder %s1920_s5, 0  ;;  %s1716_s22 = scalar_lea.hbm %s1891_s3, %s1032_s18 }
  0x7f   : > { %s260_s8 = scalar_lea.vmem [#allocation7], %s1030_s9  ;;  %s257_s14 = scalar_lea.sflag [#allocation8], %s1558_s12 }
  0x80   : > { %1107 = dma.hbm_to_vmem [thread:$0]  (!%p1935_p10), %s247_s0, 128, %s250_s29, %s1580_s26  }
  0x81   : > { %s269_s1 = sshll.u32 %s260_s8, 4  ;;  %s1297_s21 = scalar_lea.hbm %s1716_s22, 128  ;;  %s270_s1 = int_to_ptr.vmem [resolvable:$true] %s269_s1 }
  0x82   : > { %p1298_p4 = scmp.ne.s32.totalorder %s1716_s22, %s1297_s21  ;;  %s1302_s27 = scalar_lea.hbm %s1891_s3, 512 }
  0x83   : > { %p1303_p6 = scmp.lt.u32.totalorder %s1716_s22, %s1891_s3  ;;  %p1304_p1 = scmp.lt.u32.totalorder %s1302_s27, %s1297_s21 }
  0x84   : > { %p1300_p9 = pnand %p1298_p4, %p1586_p3  ;;  %p1306_p12 = scmp.lt.u32.totalorder %s1297_s21, %s1716_s22 }
  0x85   : > { %p1305_p8 = por %p1304_p1, %p1303_p6 }
  0x86   : > { %p1301_p0 = pneg %p1300_p9 }
  0x87   : > { %p1307_p13 = por %p1306_p12, %p1305_p8 }
  0x89   : > { %p1308_p5 = pnand %p1307_p13, %p1301_p0 }
  0x8b   : > { %1311 = shalt.err (!%p1308_p5)
}
  0x8c   : > { %s1312_s12 = scalar_lea.vmem %s270_s1, 128  ;;  %s1432_s9 = smov [#allocation7]  }
  0x8d   : > { %p1313_p11 = scmp.ne.s32.totalorder %s270_s1, %s1312_s12  ;;  %s1317_s10 = sshll.u32 %s1432_s9, 4  ;;  %s1318_s10 = int_to_ptr.vmem [resolvable:$false] %s1317_s10 }
  0x8e   : > { %s1319_s30 = scalar_lea.vmem %s1318_s10, 256  ;;  %p1320_p4 = scmp.lt.s32.totalorder %s270_s1, %s1318_s10 }
  0x8f   : > { %p1315_p7 = pnand %p1313_p11, %p1586_p3  ;;  %p1321_p9 = scmp.lt.s32.totalorder %s1319_s30, %s1312_s12 }
  0x91   : > { %p1316_p2 = pneg %p1315_p7  ;;  %p1322_p10 = por %p1321_p9, %p1320_p4 }
  0x93   : > { %p1323_p1 = pnand %p1322_p10, %p1316_p2 }
  0x95   : > { %1326 = shalt.err (!%p1323_p1)
}
  0x96   : > { %p1936_p6 = scmp.ne.s32.totalorder %s1920_s5, 0  ;;  %p1937_p0 = scmp.ne.s32.totalorder %s1924_s6, 0 }
  0x97   : > { %s280_s4 = sand.u32 (!%p1937_p0), 1, %s1401_s19   ;;  %p1938_p3 = scmp.ne.s32.totalorder (!%p1937_p0), %s1929_s15, 0 }
  0x98   : > { %1110 = dma.hbm_to_vmem [thread:$0]  (!%p1936_p6), %s1716_s22, 128, %s270_s1, %s257_s14  }
  0x99   : > { %278 = sbr.rel (%p1937_p0) target bundleno = 676 (0x2a4), region = 36  ;;  %s1037_s13 = sshll.u32 (!%p1937_p0), %s280_s4, 3 }
  0x9a   : > { %s281_s20 = scalar_lea.sflag (!%p1937_p0), [#allocation3], %s280_s4  ;;  %s284_s28 = scalar_lea.vmem (!%p1937_p0), [#allocation2], %s1037_s13 }
  0xa0   : > { %1372 = dma.done.wait (%p1938_p3), %s281_s20, 128  }
  0xa1   : > { %1374 = vsyncadd (%p1938_p3), %s281_s20, 4294967168  ;;  %s1939_s8 = sadd.s32 4294967295, %s1425_s25   ;;  %s291_s22 = sand.u32 1, %s1389_s16  }
  0xa2   : > { %s289_s5 = sand.u32 1, %s1939_s8   ;;  %s1038_s1 = sshll.u32 %s291_s22, 6 }
  0xa3   : > { %s290_s6 = scalar_lea.sflag [#allocation5], %s289_s5  ;;  %s1748_s14 = scalar_lea.vmem [#allocation4], %s1038_s1 }
  0xa4   : > { %p1940_p10 = scmp.ne.s32.totalorder %s1918_s7, 0 }
  0xa6   : > { %1376 = dma.done.wait (%p1940_p10), %s290_s6, 1152  }
  0xa7   : > { %1378 = vsyncadd (%p1940_p10), %s290_s6, 4294966144  ;;  %s1039_s21 = sshll.u32 %s291_s22, 3  ;;  %s308_s15 = scalar_lea.sflag [#allocation8], %s291_s22 }
  0xa8   : > { %s302_s0 = scalar_lea.vmem [#allocation6], %s1039_s21  ;;  %s1754_s26 = scalar_lea.vmem [#allocation7], %s1039_s21 }
  0xa9   : > { %1380 = dma.done.wait (%p1940_p10), %s308_s15, 128  }
  0xaa   : > { %1382 = vsyncadd (%p1940_p10), %s308_s15, 4294967168  ;;  %v422_v0 = vlaneseq  ;;  %v1433_v1 = vmov 1966171168   ;;  %v1048_v6 = vld [vmem:[%s284_s28] sm:$0xff]   ;;  %v367_v7 = vld [vmem:[%s302_s0] sm:$0xff]  ;;  %vm523_vm0 = vcmask 130048  }
  0xab   : > { %v420_v2 = vunpack.c.l.s4 %v1433_v1  ;;  %v1052_v8 = vld [vmem:[%s1748_s14] sm:$0xff]   ;;  %v1770_v10 = vunpack.c.l.bf16 %v1048_v6  ;;  %v418_v12 = vcombine.high %v367_v7, %v367_v7  ;;  %v1083_v14 = vld [vmem:[%s1748_s14 + $0x8] sm:$0xff]   ;;  %v1084_v15 = vld [vmem:[%s1748_s14 + $0x10] sm:$0xff]   ;;  %v1775_v17 = vunpack.c.h.bf16 %v1048_v6  ;;  %s1941_s7 = sld [smem:[#allocation14_spill]]  ;;  %s1942_s27 = sld [smem:[#allocation13_spill]] }
  0xac   : > { %v1761_v3 = vshrl.u32 %v422_v0, 7  ;;  %v1053_v11 = vunpack.c.l.bf16 %v1052_v8  ;;  %v1057_v16 = vunpack.c.l.bf16 %v1083_v14  ;;  %v1054_v18 = vunpack.c.h.bf16 %v1052_v8  ;;  %v1086_v24 = vld [vmem:[%s1748_s14 + $0x20] sm:$0xff]   ;;  %v1085_v39 = vld [vmem:[%s1748_s14 + $0x18] sm:$0xff]   ;;  %v1087_v54 = vld [vmem:[%s1748_s14 + $0x28] sm:$0xff]   ;;  %s1943_s30 = sld [smem:[#allocation20_spill]] }
  0xad   : > { %v421_v4 = vunpack.c.0.s8 %v420_v2  ;;  %v1058_v19 = vunpack.c.h.bf16 %v1083_v14  ;;  %v1061_v23 = vunpack.c.l.bf16 %v1084_v15  ;;  %v1062_v31 = vunpack.c.h.bf16 %v1084_v15  ;;  %v1088_v2 = vld [vmem:[%s1748_s14 + $0x30] sm:$0xff]  }
  0xae   : > { %v1768_v9 = vsub.s32 0, %v1761_v3  ;;  %v401_v20 = vmul.f32 %v1053_v11, %v1770_v10  ;;  %v403_v25 = vmul.f32 %v1057_v16, %v1770_v10  ;;  %v402_v26 = vmul.f32 %v1054_v18, %v1775_v17 }
  0xaf   : > { %v1764_v5 = vsub.s32 %v421_v4, %v1761_v3  ;;  %v404_v27 = vmul.f32 %v1058_v19, %v1775_v17  ;;  %v405_v32 = vmul.f32 %v1061_v23, %v1770_v10  ;;  %v1069_v33 = vunpack.c.l.bf16 %v1086_v24 }
  0xb0   : > { %v1070_v41 = vunpack.c.h.bf16 %v1086_v24  ;;  %v406_v45 = vmul.f32 %v1062_v31, %v1775_v17  ;;  %v1065_v48 = vunpack.c.l.bf16 %v1085_v39  ;;  %v1066_v57 = vunpack.c.h.bf16 %v1085_v39 }
  0xb1   : > { %v425_v13 = vrot.slane %v367_v7, %v1764_v5  ;;  %v432_v34 = vrot.slane %v418_v12, %v1764_v5  ;;  %v409_v47 = vmul.f32 %v1069_v33, %v1770_v10  ;;  %v1073_v63 = vunpack.c.l.bf16 %v1087_v54  ;;  %p355_p8 = scmp.lt.s32.totalorder %s1941_s7, 1  ;;  %p357_p12 = scmp.lt.s32.totalorder %s1942_s27, 1 }
  0xb2   : > { %v410_v53 = vmul.f32 %v1070_v41, %v1775_v17  ;;  %v407_v59 = vmul.f32 %v1065_v48, %v1770_v10  ;;  %v408_v7 = vmul.f32 %v1066_v57, %v1775_v17  ;;  %v1074_v8 = vunpack.c.h.bf16 %v1087_v54 }
  0xb3   : > { %v441_v21 = vrot.slane %v425_v13, %v1764_v5  ;;  %v433_v22 = vcombine.high %v425_v13, %v425_v13  ;;  %v448_v40 = vrot.slane %v432_v34, %v1764_v5  ;;  %v434_v58 = vcombine.high %v432_v34, %v432_v34  ;;  %s1964_s7 = smov (!%p355_p8, %s1941_s7), 1  ;;  %s1966_s27 = smov (!%p357_p12, %s1942_s27), 1 }
  0xb4   : > { %v1077_v12 = vunpack.c.l.bf16 %v1088_v2  ;;  %v411_v14 = vmul.f32 %v1073_v63, %v1770_v10  ;;  %v1434_v48 = vmov 0   ;;  %v652_v57 = vsub.s32 7, %v1761_v3  ;;  %s1041_s29 = sshll.u32 %s1964_s7, 1 }
  0xb5   : > { %v470_v28 = vrot.slane %v441_v21, %v1768_v9  ;;  %v455_v29 = vrot.slane %v433_v22, %v1764_v5  ;;  %v463_v30 = vcombine.high %v441_v21, %v441_v21  ;;  %v486_v51 = vrot.slane %v448_v40, %v1768_v9  ;;  %1204 = vset.pattern.permute.xlu0 %v1434_v48  ;;  %s360_s18 = sadd.s32 %s1041_s29, %s1966_s27 }
  0xb6   : > { %v462_v1 = vrot.slane %v434_v58, %v1764_v5  ;;  %v464_v16 = vcombine.high %v448_v40, %v448_v40  ;;  %v1089_v5 = vld [vmem:[%s1748_s14 + $0x38] sm:$0xff]   ;;  %v1078_v21 = vunpack.c.h.bf16 %v1088_v2  ;;  %v413_v23 = vmul.f32 %v1077_v12, %v1770_v10  ;;  %1205 = vset.pattern.permute.xlu1 %v1434_v48  ;;  %s1042_s12 = sshll.u32 %s360_s18, 3 }
  0xb7   : > { %v507_v35 = vmul.f32 %v470_v28, %v401_v20  ;;  %v474_v36 = vrot.slane %v455_v29, %v1768_v9  ;;  %v508_v37 = vmul.f32 %v470_v28, %v402_v26  ;;  %v478_v38 = vrot.slane %v463_v30, %v1768_v9  ;;  %s362_s4 = scalar_lea.vmem %s1943_s30, %s1042_s12 }
  0xb8   : > { %v465_v52 = vcombine.high %v455_v29, %v455_v29  ;;  %v515_v62 = vmul.f32 %v486_v51, %v409_v47  ;;  %v516_v6 = vmul.f32 %v486_v51, %v410_v53  ;;  %v490_v15 = vrot.slane %v462_v1, %v1768_v9 }
  0xb9   : > { %v524_v42 = vsel %vm523_vm0, %v507_v35, 0.0  ;;  %v509_v43 = vmul.f32 %v474_v36, %v403_v25  ;;  %v510_v44 = vmul.f32 %v474_v36, %v404_v27  ;;  %v527_v46 = vsel %vm523_vm0, %v508_v37, 0.0 }
  0xba   : > { %525 = vadd.xlane.f32.xlu0 %v524_v42  ;;  %v511_v50 = vmul.f32 %v478_v38, %v405_v32  ;;  %v512_v56 = vmul.f32 %v478_v38, %v406_v45  ;;  %v482_v60 = vrot.slane %v465_v52, %v1768_v9  ;;  %v548_v13 = vsel %vm523_vm0, %v515_v62, 0.0 }
  0xbb   : > { %v530_v49 = vsel %vm523_vm0, %v509_v43, 0.0  ;;  %v533_v55 = vsel %vm523_vm0, %v510_v44, 0.0  ;;  %v551_v18 = vsel %vm523_vm0, %v516_v6, 0.0  ;;  %v412_v20 = vmul.f32 %v1074_v8, %v1775_v17  ;;  %v368_v44 = vld [vmem:[%s1754_s26] sm:$0xff] }
  0xbc   : > { %531 = vadd.xlane.f32.xlu1 %v530_v49  ;;  %v536_v61 = vsel %vm523_vm0, %v511_v50, 0.0  ;;  %v539_v4 = vsel %vm523_vm0, %v512_v56, 0.0  ;;  %v513_v11 = vmul.f32 %v482_v60, %v407_v59  ;;  %v514_v19 = vmul.f32 %v482_v60, %v408_v7 }
  0xbd   : > { %v517_v24 = vmul.f32 %v490_v15, %v411_v14  ;;  %v494_v25 = vrot.slane %v464_v16, %v1768_v9  ;;  %v1081_v26 = vunpack.c.l.bf16 %v1089_v5  ;;  %v466_v27 = vcombine.high %v462_v1, %v462_v1 }
  0xbe   : > { %528 = vadd.xlane.f32.xlu0 %v527_v46  ;;  %v542_v22 = vsel %vm523_vm0, %v513_v11, 0.0  ;;  %v545_v28 = vsel %vm523_vm0, %v514_v19, 0.0  ;;  %v518_v29 = vmul.f32 %v490_v15, %v412_v20  ;;  %v414_v30 = vmul.f32 %v1078_v21, %v1775_v17 }
  0xbf   : > { %v1082_v31 = vunpack.c.h.bf16 %v1089_v5  ;;  %v554_v32 = vsel %vm523_vm0, %v517_v24, 0.0  ;;  %v519_v33 = vmul.f32 %v494_v25, %v413_v23  ;;  %v415_v34 = vmul.f32 %v1081_v26, %v1770_v10 }
  0xc0   : > { %534 = vadd.xlane.f32.xlu1 %v533_v55  ;;  %v498_v35 = vrot.slane %v466_v27, %v1768_v9  ;;  %v557_v36 = vsel %vm523_vm0, %v518_v29, 0.0  ;;  %v520_v37 = vmul.f32 %v494_v25, %v414_v30  ;;  %v586_v45 = vsub.s32 1, %v1761_v3 }
  0xc1   : > { %v416_v38 = vmul.f32 %v1082_v31, %v1775_v17  ;;  %v560_v39 = vsel %vm523_vm0, %v519_v33, 0.0  ;;  %v576_v17 = vrot.slane %v368_v44, %v1768_v9  ;;  %v597_v46 = vsub.s32 2, %v1761_v3 }
  0xc2   : > { %537 = vadd.xlane.f32.xlu0 %v536_v61  ;;  %v521_v40 = vmul.f32 %v498_v35, %v415_v34  ;;  %v563_v41 = vsel %vm523_vm0, %v520_v37, 0.0  ;;  %v587_v47 = vrot.slane %v368_v44, %v586_v45  ;;  %v608_v50 = vsub.s32 3, %v1761_v3 }
  0xc3   : > { %v522_v42 = vmul.f32 %v498_v35, %v416_v38  ;;  %v598_v49 = vrot.slane %v368_v44, %v597_v46  ;;  %v619_v52 = vsub.s32 4, %v1761_v3  ;;  %v630_v9 = vsub.s32 5, %v1761_v3 }
  0xc4   : > { %540 = vadd.xlane.f32.xlu1 %v539_v4  ;;  %v566_v10 = vsel %vm523_vm0, %v521_v40, 0.0  ;;  %v609_v51 = vrot.slane %v368_v44, %v608_v50  ;;  %v641_v55 = vsub.s32 6, %v1761_v3  ;;  %v653_v58 = vrot.slane %v368_v44, %v652_v57 }
  0xc5   : > { %v569_v43 = vsel %vm523_vm0, %v522_v42, 0.0  ;;  %v620_v53 = vrot.slane %v368_v44, %v619_v52  ;;  %v631_v54 = vrot.slane %v368_v44, %v630_v9  ;;  %v758_v52 = vand.u32 127, %v422_v0 }
  0xc6   : > { %549 = vadd.xlane.f32.xlu0 %v548_v13  ;;  %v642_v56 = vrot.slane %v368_v44, %v641_v55  ;;  %vm768_vm1 = vcmask 130112   ;;  %vm833_vm2 = vcmask 1041409   ;;  %vm835_vm3 = vcmask 1042434  }
  0xc7   : > { %vm837_vm4 = vcmask 1043459   ;;  %vm839_vm5 = vcmask 1044484   ;;  %vm841_vm6 = vcmask 1045509   ;;  %vm843_vm7 = vcmask 1046534  }
  0xc8   : > { %552 = vadd.xlane.f32.xlu1 %v551_v18  ;;  %vm845_vm8 = vcmask 1047559   ;;  %vm851_vm9 = vcmask 7168  }
  0xca   : > { %543 = vadd.xlane.f32.xlu0 %v542_v22 }
  0xcc   : > { %546 = vadd.xlane.f32.xlu1 %v545_v28 }
  0xce   : > { %555 = vadd.xlane.f32.xlu0 %v554_v32 }
  0xd0   : > { %558 = vadd.xlane.f32.xlu1 %v557_v36 }
  0xd2   : > { %561 = vadd.xlane.f32.xlu0 %v560_v39 }
  0xd4   : > { %564 = vadd.xlane.f32.xlu1 %v563_v41 }
  0xd6   : > { %567 = vadd.xlane.f32.xlu0 %v566_v10 }
  0xd8   : > { %570 = vadd.xlane.f32.xlu1 %v569_v43 }
  0xe9   : > { %582 = vbcast.lane.b32.xlu1 %v576_v17, 264 }
  0xec   : > { %578 = vbcast.lane.b32.xlu0 %v576_v17, 256 }
  0xed   : > { %589 = vbcast.lane.b32.xlu1 %v587_v47, 256 }
  0xf0   : > { %600 = vbcast.lane.b32.xlu0 %v598_v49, 256 }
  0xf1   : > { %593 = vbcast.lane.b32.xlu1 %v587_v47, 264 }
  0xf4   : > { %611 = vbcast.lane.b32.xlu0 %v609_v51, 256 }
  0xf5   : > { %604 = vbcast.lane.b32.xlu1 %v598_v49, 264 }
  0xf8   : > { %622 = vbcast.lane.b32.xlu0 %v620_v53, 256 }
  0xf9   : > { %615 = vbcast.lane.b32.xlu1 %v609_v51, 264 }
  0xfc   : > { %633 = vbcast.lane.b32.xlu0 %v631_v54, 256 }
  0xfd   : > { %626 = vbcast.lane.b32.xlu1 %v620_v53, 264 }
 0x100   : > { %644 = vbcast.lane.b32.xlu0 %v642_v56, 256 }
 0x101   : > { %637 = vbcast.lane.b32.xlu1 %v631_v54, 264  ;;  %v763_v54 = vadd.s32 4294967288, %v758_v52 }
 0x103   : > { %v766_v57 = vsub.s32 %v763_v54, %v1761_v3 }
 0x104   : > { %655 = vbcast.lane.b32.xlu0 %v653_v58, 256 }
 0x105   : > { %648 = vbcast.lane.b32.xlu1 %v642_v56, 264 }
 0x109   : > { %659 = vbcast.lane.b32.xlu1 %v653_v58, 264 }
 0x147   : > { %v526_v59 = vpop.xlane.xlu0 %525 }
 0x149   : > { %v532_v60 = vpop.xlane.xlu1 %531 }
 0x14b   : > { %v529_v61 = vpop.xlane.xlu0 %528 }
 0x14d   : > { %v535_v62 = vpop.xlane.xlu1 %534 }
 0x14f   : > { %v538_v63 = vpop.xlane.xlu0 %537 }
 0x151   : > { %v541_v1 = vpop.xlane.xlu1 %540 }
 0x153   : > { %v550_v2 = vpop.xlane.xlu0 %549 }
 0x155   : > { %v553_v4 = vpop.xlane.xlu1 %552 }
 0x157   : > { %v544_v6 = vpop.xlane.xlu0 %543 }
 0x159   : > { %v547_v7 = vpop.xlane.xlu1 %546 }
 0x15b   : > { %v556_v8 = vpop.xlane.xlu0 %555 }
 0x15d   : > { %v559_v11 = vpop.xlane.xlu1 %558 }
 0x15f   : > { %v562_v12 = vpop.xlane.xlu0 %561 }
 0x161   : > { %v565_v13 = vpop.xlane.xlu1 %564 }
 0x163   : > { %v568_v14 = vpop.xlane.xlu0 %567 }
 0x165   : > { %v571_v15 = vpop.xlane.xlu1 %570 }
 0x167   : > { %v579_v16 = vpop.permute.xlu0 %578 }
 0x168   : > { %v677_v5 = vmul.f32 %v579_v16, %v526_v59  ;;  %v761_v59 = vsub.s32 %v758_v52, %v1761_v3 }
 0x169   : > { %v583_v18 = vpop.permute.xlu1 %582 }
 0x16a   : > { %v678_v19 = vmul.f32 %v583_v18, %v529_v61  ;;  %710 = vperm.xlu0 %1204, %v677_v5  }
 0x16b   : > { %v601_v20 = vpop.permute.xlu0 %600 }
 0x16c   : > { %713 = vperm.xlu1 %1205, %v678_v19   ;;  %v681_v25 = vmul.f32 %v601_v20, %v538_v63 }
 0x16d   : > { %v590_v21 = vpop.permute.xlu1 %589 }
 0x16e   : > { %v679_v22 = vmul.f32 %v590_v21, %v532_v60 }
 0x16f   : > { %v612_v23 = vpop.permute.xlu0 %611 }
 0x170   : > { %716 = vperm.xlu1 %1205, %v679_v22   ;;  %v683_v33 = vmul.f32 %v612_v23, %v544_v6 }
 0x171   : > { %v594_v24 = vpop.permute.xlu1 %593 }
 0x172   : > { %v680_v26 = vmul.f32 %v594_v24, %v535_v62 }
 0x173   : > { %v623_v27 = vpop.permute.xlu0 %622 }
 0x174   : > { %719 = vperm.xlu0 %1204, %v680_v26   ;;  %722 = vperm.xlu1 %1205, %v681_v25   ;;  %v685_v29 = vmul.f32 %v623_v27, %v550_v2 }
 0x175   : > { %v605_v28 = vpop.permute.xlu1 %604 }
 0x176   : > { %v682_v30 = vmul.f32 %v605_v28, %v541_v1 }
 0x177   : > { %v634_v31 = vpop.permute.xlu0 %633 }
 0x178   : > { %725 = vperm.xlu0 %1204, %v682_v30   ;;  %734 = vperm.xlu1 %1205, %v685_v29   ;;  %v687_v36 = vmul.f32 %v634_v31, %v556_v8 }
 0x179   : > { %v616_v32 = vpop.permute.xlu1 %615 }
 0x17a   : > { %v684_v39 = vmul.f32 %v616_v32, %v547_v7 }
 0x17b   : > { %v645_v34 = vpop.permute.xlu0 %644 }
 0x17c   : > { %728 = vperm.xlu1 %1205, %v683_v33   ;;  %v689_v40 = vmul.f32 %v645_v34, %v562_v12 }
 0x17d   : > { %v627_v35 = vpop.permute.xlu1 %626 }
 0x17e   : > { %v686_v37 = vmul.f32 %v627_v35, %v553_v4 }
 0x17f   : > { %v656_v41 = vpop.permute.xlu0 %655 }
 0x180   : > { %737 = vperm.xlu0 %1204, %v686_v37   ;;  %740 = vperm.xlu1 %1205, %v687_v36   ;;  %v691_v10 = vmul.f32 %v656_v41, %v568_v14 }
 0x181   : > { %v638_v38 = vpop.permute.xlu1 %637 }
 0x182   : > { %v688_v43 = vmul.f32 %v638_v38, %v559_v11 }
 0x184   : > { %731 = vperm.xlu0 %1204, %v684_v39   ;;  %746 = vperm.xlu1 %1205, %v689_v40  }
 0x185   : > { %v649_v42 = vpop.permute.xlu1 %648 }
 0x186   : > { %v690_v44 = vmul.f32 %v649_v42, %v565_v13 }
 0x188   : > { %743 = vperm.xlu0 %1204, %v688_v43   ;;  %752 = vperm.xlu1 %1205, %v691_v10  }
 0x189   : > { %v660_v45 = vpop.permute.xlu1 %659 }
 0x18a   : > { %v692_v17 = vmul.f32 %v660_v45, %v571_v15 }
 0x18c   : > { %749 = vperm.xlu0 %1204, %v690_v44  }
 0x190   : > { %755 = vperm.xlu0 %1204, %v692_v17  }
 0x1e9   : > { %v711_v48 = vpop.permute.xlu0 %710 }
 0x1ea   : > { %v762_v0 = vrot.slane %v711_v48, %v761_v59 }
 0x1eb   : > { %v714_v46 = vpop.permute.xlu1 %713 }
 0x1ec   : > { %v767_v62 = vrot.slane %v714_v46, %v766_v57 }
 0x1ee   : > { %v769_v12 = vsel %vm768_vm1, %v767_v62, %v762_v0 }
 0x1ef   : > { %v717_v47 = vpop.permute.xlu1 %716 }
 0x1f0   : > { %v773_v63 = vrot.slane %v717_v47, %v761_v59 }
 0x1f3   : > { %v723_v49 = vpop.permute.xlu1 %722  ;;  %v720_v50 = vpop.permute.xlu0 %719 }
 0x1f4   : > { %v777_v60 = vrot.slane %v720_v50, %v766_v57  ;;  %v782_v2 = vrot.slane %v723_v49, %v761_v59 }
 0x1f6   : > { %v778_v7 = vsel %vm768_vm1, %v777_v60, %v773_v63 }
 0x1f7   : > { %v735_v51 = vpop.permute.xlu1 %734  ;;  %v726_v53 = vpop.permute.xlu0 %725  ;;  %v834_v14 = vsel %vm833_vm2, %v778_v7, %v769_v12 }
 0x1f8   : > { %v786_v61 = vrot.slane %v726_v53, %v766_v57  ;;  %v800_v20 = vrot.slane %v735_v51, %v761_v59 }
 0x1fa   : > { %v787_v11 = vsel %vm768_vm1, %v786_v61, %v782_v2 }
 0x1fb   : > { %v729_v9 = vpop.permute.xlu1 %728  ;;  %v836_v5 = vsel %vm835_vm3, %v787_v11, %v834_v14 }
 0x1fc   : > { %v791_v8 = vrot.slane %v729_v9, %v761_v59 }
 0x1ff   : > { %v738_v55 = vpop.permute.xlu0 %737  ;;  %v741_v56 = vpop.permute.xlu1 %740 }
 0x200   : > { %v804_v15 = vrot.slane %v738_v55, %v766_v57  ;;  %v809_v18 = vrot.slane %v741_v56, %v761_v59 }
 0x202   : > { %v805_v25 = vsel %vm768_vm1, %v804_v15, %v800_v20 }
 0x203   : > { %v732_v58 = vpop.permute.xlu0 %731  ;;  %v747_v4 = vpop.permute.xlu1 %746 }
 0x204   : > { %v795_v1 = vrot.slane %v732_v58, %v766_v57  ;;  %v818_v21 = vrot.slane %v747_v4, %v761_v59 }
 0x206   : > { %v796_v3 = vsel %vm768_vm1, %v795_v1, %v791_v8 }
 0x207   : > { %v744_v6 = vpop.permute.xlu0 %743  ;;  %v838_v22 = vsel %vm837_vm4, %v796_v3, %v836_v5  ;;  %v753_v23 = vpop.permute.xlu1 %752 }
 0x208   : > { %v813_v13 = vrot.slane %v744_v6, %v766_v57  ;;  %v827_v28 = vrot.slane %v753_v23, %v761_v59  ;;  %v840_v30 = vsel %vm839_vm5, %v805_v25, %v838_v22 }
 0x20a   : > { %v814_v24 = vsel %vm768_vm1, %v813_v13, %v809_v18 }
 0x20b   : > { %v750_v16 = vpop.permute.xlu0 %749  ;;  %v842_v31 = vsel %vm841_vm6, %v814_v24, %v840_v30 }
 0x20c   : > { %v822_v19 = vrot.slane %v750_v16, %v766_v57 }
 0x20e   : > { %v823_v26 = vsel %vm768_vm1, %v822_v19, %v818_v21 }
 0x20f   : > { %v756_v27 = vpop.permute.xlu0 %755  ;;  %v844_v33 = vsel %vm843_vm7, %v823_v26, %v842_v31 }
 0x210   : > { %v831_v29 = vrot.slane %v756_v27, %v766_v57 }
 0x212   : > { %v832_v32 = vsel %vm768_vm1, %v831_v29, %v827_v28 }
 0x213   : > { %v846_v34 = vsel %vm845_vm8, %v832_v32, %v844_v33 }
 0x214   : > { %v848_v35 = vsel %vm523_vm0, %v846_v34, 0.0 }
 0x215   : > { %849 = vadd.xlane.f32.xlu1 %v848_v35 }
 0x2a2   : > { %v850_v36 = vpop.xlane.xlu1 %849 }
 0x2a3   : > { %852 = vst.msk [vmem:[%s362_s4] sm:$0xff] %vm851_vm9, %v850_v36 }
 0x2a4 PF: > { %s23_s25 = sadd.s32 1, %s1425_s25   ;;  %s1944_s13 = sld [smem:[#allocation12_spill]] }
 0x2a5   : > { %p20_p13 = scmp.ge.s32.totalorder %s23_s25, 6   ;;  %s1945_s20 = sld [smem:[#allocation17_spill]] }
 0x2a6   : > { %s1946_s28 = sld [smem:[#allocation15_spill]]  ;;  %s1947_s8 = sld [smem:[#allocation16_spill]] }
 0x2a7   : > { %s1948_s15 = smov %s1389_s16  ;;  %s1949_s16 = smov %s1393_s17 }
 0x2a8   : > { %s1950_s17 = smov %s1555_s11  ;;  %s1951_s18 = smov %s1401_s19 }
 0x2a9   : > { %s1953_s21 = smov %s1417_s23  ;;  %s1954_s22 = smov %s1421_s24 }
 0x2aa   : > { %s1952_s19 = smov %s1944_s13  ;;  %22 = sbr.rel (!%p20_p13) target bundleno = 15 (0xf), region = 113 }
 0x2ac   : > { %s1955_s23 = smov %s1946_s28  ;;  %s1956_s24 = smov %s1947_s8 }
 0x2b1   :  { %880 = vsyncpa [#allocation3], 1 }
 0x2b2   :  { %882 = vsyncpa [#allocation3 + $0x1], 1 }
 0x2b3   :  { %883 = vsyncpa [#allocation5], 1 }
 0x2b4   :  { %885 = vsyncpa [#allocation5 + $0x1], 1 }
 0x2b5   :  { %886 = vsyncpa [#allocation8], 1 }
 0x2b6   :  { %888 = vsyncpa [#allocation8 + $0x1], 1 }

</bundles_post_ra>
